<compile_context>
chip_gen: v6e
topology: v6e:2x2x1
jax: 0.10.0
libtpu: 0.0.40
codegen_flags: <defaults>
</compile_context>

<pallas_src>
import math

import numpy as np
import jax
import jax.numpy as jnp
from jax.experimental import pallas as pl
from jax.experimental.pallas import tpu as pltpu


# ----------------------------- helpers (glue) -------------------------------

def _round_up(x: int, m: int) -> int:
    return ((x + m - 1) // m) * m


def _split_dim(size: int, preferred: int, align: int):
    """Pick (tile, padded) with tile % align == 0, tile | padded, padded >= size.

    Keeps the tile <= preferred while minimizing zero padding (e.g. K=640 with
    preferred 1024 gives one 640-wide step, not a 1024-wide step half zeros).
    """
    aligned = _round_up(size, align)
    if aligned <= preferred:
        return aligned, aligned
    steps = -(-aligned // preferred)               # ceil
    tile = _round_up(-(-aligned // steps), align)  # ceil, re-aligned
    return tile, tile * steps


def _row_align(dtype) -> int:
    """Second-to-last-dim alignment for a given dtype (sublane packing)."""
    itemsize = jnp.dtype(dtype).itemsize
    if itemsize >= 4:
        return 8
    if itemsize == 2:
        return 16
    return 32


def hadamard_matrix_np(n: int) -> np.ndarray:
    """Sylvester-construction Hadamard matrix of size n (power of 2), +-1."""
    assert n > 0 and (n & (n - 1)) == 0, "blocksize must be a power of 2"
    h = np.array([[1.0]], dtype=np.float64)
    while h.shape[0] < n:
        h = np.block([[h, h], [h, -h]])
    return h


# ------------------------------ Pallas kernels --------------------------------

def _mm_kernel_acc_in_out(x_ref, w_ref, o_ref):
    """f32 output: accumulate directly into the resident output block."""
    @pl.when(pl.program_id(2) == 0)
    def _init():
        o_ref[...] = jnp.zeros_like(o_ref)

    o_ref[...] += jnp.dot(x_ref[...], w_ref[...],
                          preferred_element_type=jnp.float32)


def _mm_kernel_acc_scratch(x_ref, w_ref, o_ref, acc_ref):
    """Narrow (e.g. bf16) output: accumulate in a f32 VMEM scratch."""
    @pl.when(pl.program_id(2) == 0)
    def _init():
        acc_ref[...] = jnp.zeros_like(acc_ref)

    acc_ref[...] += jnp.dot(x_ref[...], w_ref[...],
                            preferred_element_type=jnp.float32)

    @pl.when(pl.program_id(2) == pl.num_programs(2) - 1)
    def _finalize():
        o_ref[...] = acc_ref[...].astype(o_ref.dtype)


def _tiled_matmul_padded(x_pad, w_pad, *, tm, tn, tk, out_dtype,
                         weight_buffers=2):
    """out[Mp, Np] = x_pad[Mp, Kp] @ w_pad[Kp, Np]; all dims pre-padded/tiled."""
    Mp, Kp = x_pad.shape
    Kp2, Np = w_pad.shape
    assert Kp == Kp2, (Kp, Kp2)
    assert Mp % tm == 0 and Np % tn == 0 and Kp % tk == 0

    grid = (Mp // tm, Np // tn, Kp // tk)          # K last ("arbitrary")

    if weight_buffers != 2:
        w_spec = pl.BlockSpec((tk, tn), lambda i, j, k: (k, j),
                              pipeline_mode=pl.Buffered(weight_buffers))
    else:
        w_spec = pl.BlockSpec((tk, tn), lambda i, j, k: (k, j))

    use_scratch = jnp.dtype(out_dtype) != jnp.dtype(jnp.float32)
    kernel = _mm_kernel_acc_scratch if use_scratch else _mm_kernel_acc_in_out
    scratch = [pltpu.VMEM((tm, tn), jnp.float32)] if use_scratch else []

    return pl.pallas_call(
        kernel,
        out_shape=jax.ShapeDtypeStruct((Mp, Np), out_dtype),
        grid_spec=pltpu.PrefetchScalarGridSpec(
            num_scalar_prefetch=0,
            grid=grid,
            in_specs=[
                pl.BlockSpec((tm, tk), lambda i, j, k: (i, k)),
                w_spec,
            ],
            out_specs=pl.BlockSpec((tm, tn), lambda i, j, k: (i, j)),
            scratch_shapes=scratch,
        ),
        compiler_params=pltpu.CompilerParams(
            dimension_semantics=("parallel", "parallel", "arbitrary")),
    )(x_pad, w_pad)


# ------------------------------- module port ---------------------------------

class HadLinear:
    """hadamard(x) @ weight.T with the transform folded into the weight."""

    PREF_TM = 512   # bigger M tile cuts weight re-streaming (key on v5e)
    PREF_TN = 512
    PREF_TK = 1024

    def __init__(self, weight, blocksize, do_hadamard,
                 compute_dtype=jnp.bfloat16):
        self.blocksize = blocksize
        self.do_hadamard = do_hadamard
        self.compute_dtype = jnp.dtype(compute_dtype)

        w64 = np.asarray(weight, dtype=np.float64)
        if do_hadamard:
            w64 = w64 / math.sqrt(blocksize)       # matches PyTorch __init__
        # Mirrors the PyTorch parameter (N, K) after the init-time scaling.
        self.weight = jnp.asarray(w64, dtype=weight.dtype)

        # One-time host-side fold of the blockwise Hadamard into the weight:
        # hadamard(x) @ W.T == x @ (W_block @ H/sqrt(bs))_block.T  (H symmetric)
        if do_hadamard:
            n_out, k_in = w64.shape
            assert k_in % blocksize == 0, (
                "with do_hadamard=True the weight's in_features must already "
                "be padded to a multiple of blocksize")
            h_s = hadamard_matrix_np(blocksize) / math.sqrt(blocksize)
            wb = w64.reshape(n_out, k_in // blocksize, blocksize)
            w_fold = np.einsum("nmc,cb->nmb", wb, h_s).reshape(n_out, k_in)
        else:
            w_fold = w64

        n_out, k_in = w_fold.shape
        self.out_features = n_out
        self._k_features = k_in

        # Fixed weight-side tiling, chosen once.
        self.tn, self.Np = _split_dim(n_out, self.PREF_TN, 128)
        self.tk, self.Kp = _split_dim(k_in, self.PREF_TK, 128)

        # Pre-transpose to (K, N), pre-pad to (Kp, Np), pre-cast to the compute
        # dtype — the forward never touches the weight again.
        w_kn = np.zeros((self.Kp, self.Np), dtype=np.float64)
        w_kn[:k_in, :n_out] = w_fold.T
        self.weight_kn = jnp.asarray(w_kn, dtype=self.compute_dtype)

    def __call__(self, x: jnp.ndarray) -> jnp.ndarray:
        lead_shape = x.shape[:-1]
        k_in = x.shape[-1]
        if self.do_hadamard:
            assert _round_up(k_in, self.blocksize) == self._k_features, (
                k_in, self.blocksize, self._k_features)
        else:
            assert k_in == self._k_features, (k_in, self._k_features)

        out_dtype = x.dtype
        x2 = x.reshape(-1, k_in)
        M = x2.shape[0]

        # M tile: align to the packed minimum of both compute and output dtype.
        row_align = max(_row_align(self.compute_dtype), _row_align(out_dtype))
        tm, Mp = _split_dim(M, self.PREF_TM, row_align)
        tn = self.tn

        # v7x has 2 TensorCores: keep the parallel (i, j) grid >= 2 tiles when
        # alignment allows.  Harmless (one extra tiny step) on 1-TC chips.
        if (Mp // tm) * (self.Np // tn) == 1:
            if tn % 256 == 0:
                tn //= 2
            elif tm % (2 * row_align) == 0:
                tm //= 2

        # Single pad covers both the Hadamard block pad and the kernel pad;
        # the compute-dtype cast runs on the unpadded activation.
        if x2.dtype != self.compute_dtype:
            x2 = x2.astype(self.compute_dtype)
        if (Mp, self.Kp) != (M, k_in):
            x2 = jnp.pad(x2, ((0, Mp - M), (0, self.Kp - k_in)))

        # Memory-bound regime (single M tile, several K steps): deepen the
        # weight-stream pipeline.
        weight_buffers = 3 if (Mp // tm == 1 and self.Kp // self.tk >= 3) else 2

        out = _tiled_matmul_padded(x2, self.weight_kn,
                                   tm=tm, tn=tn, tk=self.tk,
                                   out_dtype=out_dtype,
                                   weight_buffers=weight_buffers)
        if (Mp, self.Np) != (M, self.out_features):
            out = out[:M, :self.out_features]
        return out.reshape(lead_shape + (self.out_features,))


# -------------------------- host (numpy) reference ---------------------------

def reference_forward_np(x, weight_scaled, blocksize, do_hadamard):
    """float64 numpy replica of the PyTorch forward (explicit hadamard path)."""
    x = np.asarray(x, dtype=np.float64)
    w = np.asarray(weight_scaled, dtype=np.float64)
    if do_hadamard:
        k = x.shape[-1]
        kp = _round_up(k, blocksize)
        if kp != k:
            pad = [(0, 0)] * (x.ndim - 1) + [(0, kp - k)]
            x = np.pad(x, pad)
        mult = x.shape[-1] // blocksize
        h = hadamard_matrix_np(blocksize)
        xb = x.reshape(x.shape[:-1] + (mult, blocksize))
        xb = np.einsum("...b,cb->...c", xb, h) / math.sqrt(blocksize)
        x = xb.reshape(xb.shape[:-2] + (mult * blocksize,))
    return np.einsum("...k,nk->...n", x, w)


# ----------------------------------- main -------------------------------------

if __name__ == "__main__":
    key = jax.random.PRNGKey(0)
    k_x, k_w1, k_w2 = jax.random.split(key, 3)

    batch, seq = 2, 8
    in_features = 48          # not a multiple of blocksize -> exercises padding
    blocksize = 32
    out_features = 32
    k_padded = _round_up(in_features, blocksize)   # 64

    x = jax.random.normal(k_x, (batch, seq, in_features), dtype=jnp.float32)
    w_had = jax.random.normal(k_w1, (out_features, k_padded), dtype=jnp.float32)

    # f32 compute path: tight correctness check of the kernel itself.
    mod_f32 = HadLinear(w_had, blocksize, do_hadamard=True,
                        compute_dtype=jnp.float32)
    y_f32 = mod_f32(x)
    jax.block_until_ready(y_f32)
    y_ref = reference_forward_np(np.asarray(x), np.asarray(mod_f32.weight),
                                 blocksize, True)
    np.testing.assert_allclose(np.asarray(y_f32), y_ref, rtol=1e-4, atol=1e-4)
    assert y_f32.shape == (batch, seq, out_features)

    # Default bf16 compute (v5e/v6e/v7x MXU peak), f32 accumulation, f32 output
    # (no-scratch accumulate-into-output kernel).
    mod_bf16 = HadLinear(w_had, blocksize, do_hadamard=True)
    y_bf16 = mod_bf16(x)
    jax.block_until_ready(y_bf16)
    np.testing.assert_allclose(np.asarray(y_bf16), y_ref, rtol=5e-2, atol=5e-2)
    assert y_bf16.shape == (batch, seq, out_features)

    # do_hadamard=False: plain linear, weight uses the original in_features.
    w_plain = jax.random.normal(k_w2, (out_features, in_features),
                                dtype=jnp.float32)
    mod_plain = HadLinear(w_plain, blocksize, do_hadamard=False)
    y_plain = mod_plain(x)
    jax.block_until_ready(y_plain)
    y_plain_ref = reference_forward_np(np.asarray(x), np.asarray(mod_plain.weight),
                                       blocksize, False)
    np.testing.assert_allclose(np.asarray(y_plain), y_plain_ref,
                               rtol=5e-2, atol=5e-2)
    assert y_plain.shape == (batch, seq, out_features)

    # bf16 activations (bf16 output) exercise the scratch-accumulator kernel.
    y_act_bf16 = mod_bf16(x.astype(jnp.bfloat16))
    jax.block_until_ready(y_act_bf16)
    assert y_act_bf16.dtype == jnp.bfloat16
    np.testing.assert_allclose(np.asarray(y_act_bf16, dtype=np.float32), y_ref,
                               rtol=7e-2, atol=7e-2)

    print("KERNEL_OK")
</pallas_src>

<mosaic_0001>
module attributes {stable_mosaic.version = 11 : i64} {
  func.func @_mm_kernel_acc_in_out(%arg0: i32, %arg1: i32, %arg2: i32, %arg3: memref<8x128xf32, #tpu.memory_space<vmem>>, %arg4: memref<128x128xf32, #tpu.memory_space<vmem>>, %arg5: memref<8x128xf32, #tpu.memory_space<vmem>>) attributes {dimension_semantics = [#tpu.dimension_semantics<parallel>, #tpu.dimension_semantics<parallel>, #tpu.dimension_semantics<arbitrary>], iteration_bounds = array<i64: 2, 1, 1>, scalar_prefetch = 0 : i64, scratch_operands = 0 : i64, tpu.core_type = #tpu.core_type<tc>, window_params = [{transform_indices = @transform_0, window_bounds = array<i64: 8, 128>}, {transform_indices = @transform_1, window_bounds = array<i64: 128, 128>}, {transform_indices = @transform_2, window_bounds = array<i64: 8, 128>}]} {
    %c0_i32 = arith.constant 0 : i32
    %0 = arith.cmpi eq, %arg2, %c0_i32 : i32
    %1 = arith.extui %0 : i1 to i32
    %c0_i32_0 = arith.constant 0 : i32
    %2 = arith.cmpi ne, %1, %c0_i32_0 : i32
    scf.if %2 {
      %cst_8 = arith.constant 0.000000e+00 : f32
      %9 = vector.broadcast %cst_8 : f32 to vector<8x128xf32>
      %c0_9 = arith.constant 0 : index
      %c0_10 = arith.constant 0 : index
      %10 = vector.load %arg5[%c0_9, %c0_10] : memref<8x128xf32, #tpu.memory_space<vmem>>, vector<8x128xf32>
      tpu.vector_store %arg5[%c0_9, %c0_10], %9 {strides = array<i32>} : memref<8x128xf32, #tpu.memory_space<vmem>>, vector<8x128xf32>,
    } else {
    }
    %c0 = arith.constant 0 : index
    %c0_1 = arith.constant 0 : index
    %3 = vector.load %arg5[%c0, %c0_1] : memref<8x128xf32, #tpu.memory_space<vmem>>, vector<8x128xf32>
    %c0_2 = arith.constant 0 : index
    %c0_3 = arith.constant 0 : index
    %4 = vector.load %arg3[%c0_2, %c0_3] : memref<8x128xf32, #tpu.memory_space<vmem>>, vector<8x128xf32>
    %c0_4 = arith.constant 0 : index
    %c0_5 = arith.constant 0 : index
    %5 = vector.load %arg4[%c0_4, %c0_5] : memref<128x128xf32, #tpu.memory_space<vmem>>, vector<128x128xf32>
    %cst = arith.constant dense<0.000000e+00> : vector<8x128xf32>
    %6 = tpu.matmul %4, %5, %cst {dimension_numbers = #tpu.dot_dimension_numbers<[1], [0], [0], [1], [0, 0, 1, 1], [], []>} : vector<8x128xf32>, vector<128x128xf32>, vector<8x128xf32> -> vector<8x128xf32>
    %7 = arith.addf %3, %6 : vector<8x128xf32>
    %c0_6 = arith.constant 0 : index
    %c0_7 = arith.constant 0 : index
    %8 = vector.load %arg5[%c0_6, %c0_7] : memref<8x128xf32, #tpu.memory_space<vmem>>, vector<8x128xf32>
    tpu.vector_store %arg5[%c0_6, %c0_7], %7 {strides = array<i32>} : memref<8x128xf32, #tpu.memory_space<vmem>>, vector<8x128xf32>,
    return
  }
  func.func @transform_0(%arg0: i32, %arg1: i32, %arg2: i32) -> (i32, i32) {
    %c0_i32 = arith.constant 0 : i32
    return %arg0, %arg2 : i32, i32
  }
  func.func @transform_1(%arg0: i32, %arg1: i32, %arg2: i32) -> (i32, i32) {
    %c0_i32 = arith.constant 0 : i32
    return %arg2, %arg1 : i32, i32
  }
  func.func @transform_2(%arg0: i32, %arg1: i32, %arg2: i32) -> (i32, i32) {
    %c0_i32 = arith.constant 0 : i32
    return %arg0, %arg1 : i32, i32
  }
}

</mosaic_0001>

<bundles_post_ra>
// kernel: tpu_custom_call.1
= control target key start
LH: loop header
LB: loop body
LE: loop exit
PB: predicated region body
PF: predicated region fallthrough
CT: control target
= control target key end

     0   :  { %7 = vsyncpa [#allocation3], 0  ;;  %s903_s0 = inlined_call_operand.hbm [shape: f32[16,128], index: 0, kind: input, shape index: {}]   ;;  %s904_s1 = inlined_call_operand.hbm [shape: f32[128,128], index: 1, kind: input, shape index: {}]   ;;  %s905_s2 = inlined_call_operand.hbm [shape: f32[16,128], index: 2, kind: output, shape index: {}]  }
   0x1   :  { %9 = vsyncpa [#allocation3 + $0x1], 0 }
   0x2   :  { %10 = vsyncpa [#allocation6], 0 }
   0x3   :  { %11 = vsyncpa [#allocation4], 0 }
   0x4   :  { %13 = vsyncpa [#allocation4 + $0x1], 0  ;;  %s723_s9 = smov 0   ;;  %s725_s10 = smov 0  }
   0x5   :  { %s727_s11 = smov 0   ;;  %s729_s12 = smov 0  }
   0x6   :  { %s731_s13 = smov 0   ;;  %s733_s14 = smov 0  }
   0x7 LB: > { %s417_s15 = sadd.s32 4294967295, %s699_s14   ;;  %s418_s16 = sadd.s32 4294967294, %s699_s14   ;;  %s699_s14 = sphi %s733_s14, %s19_s14   ;;  %s695_s13 = sphi %s731_s13, %s923_s13   ;;  %s691_s12 = sphi %s729_s12, %s922_s12   ;;  %s687_s11 = sphi %s727_s11, %s921_s11   ;;  %s683_s10 = sphi %s725_s10, %s920_s10   ;;  %s679_s9 = sphi %s723_s9, %s919_s9  }
   0x8   : > { %p60_p0 = scmp.ne.s32.totalorder %s683_s10, %s679_s9  ;;  %p757_p1 = scmp.eq.s32.totalorder %s417_s15, 0 }
   0x9   : > { %p761_p2 = scmp.eq.s32.totalorder %s417_s15, 1  ;;  %p120_p3 = scmp.eq.s32.totalorder %s418_s16, 1 }
   0xa   : > { %p767_p4 = por %p757_p1, %p60_p0  ;;  %p419_p5 = scmp.ge.s32.totalorder %s699_s14, 1 }
   0xb   : > { %p772_p6 = por %p120_p3, %p60_p0  ;;  %p127_p7 = scmp.lt.s32.totalorder %s699_s14, 3 }
   0xc   : > { %s909_s19 = scalar_select %p767_p4, 1, 0 }
   0xd   : > { %s910_s20 = scalar_select %p772_p6, 1, 0 }
   0xe   : > { %p777_p8 = pnand %p419_p5, %p127_p7  ;;  %s701_s22 = smov [#allocation5]  }
   0xf   : > { %s143_s23 = sshll.u32 %s701_s22, 4  ;;  %s38_s25 = sadd.s32 1, %s695_s13  ;;  %s144_s23 = int_to_ptr.vmem [resolvable:$true] %s143_s23 }
  0x10   : > { %p492_p9 = pneg %p777_p8  ;;  %s572_s26 = scalar_lea.vmem %s144_s23, 2048 }
  0x11   : > { %p573_p13 = scmp.ne.s32.totalorder %s144_s23, %s572_s26  ;;  %p580_p5 = scmp.lt.s32.totalorder %s144_s23, %s144_s23 }
  0x12   : > { %p786_p11 = pnand %p492_p9, %p757_p1  ;;  %p581_p7 = scmp.lt.s32.totalorder %s572_s26, %s572_s26 }
  0x14   : > { %p563_p12 = pneg %p786_p11  ;;  %p582_p6 = por %p581_p7, %p580_p5 }
  0x16   : > { %p575_p0 = pnand %p573_p13, %p563_p12 }
  0x18   : > { %p576_p3 = pneg %p575_p0 }
  0x1a   : > { %p583_p4 = pnand %p582_p6, %p576_p3 }
  0x1c   : > { %586 = shalt.err (!%p583_p4)
}
  0x1d   : > { %s702_s27 = smov 128   ;;  %s703_s28 = smov 8  }
  0x1e   : > { %495 = dma.hbm_to_vmem [thread:$0]  (!%p786_p11), %s904_s1, 2048, %s144_s23, [#allocation6], %s702_s27, %s702_s27, %s703_s28  }
  0x1f   : > { %p40_p6 = scmp.ge.s32.totalorder %s38_s25, 2  ;;  %s47_s3 = sadd.s32 1, %s687_s11 }
  0x20   : > { %p54_p4 = scmp.ne.s32.totalorder %s687_s11, %s683_s10  ;;  %p55_p9 = scmp.eq.s32.totalorder %s699_s14, 0 }
  0x21   : > { %s925_s25 = smov (%p40_p6, %s38_s25), 0  ;;  %p505_p0 = scmp.lt.s32.totalorder %s699_s14, 2 }
  0x22   : > { %p804_p12 = por %p55_p9, %p54_p4  ;;  %p810_p13 = por %p761_p2, %p54_p4 }
  0x23   : > { %s42_s6 = ssub.s32 %s695_s13, %s925_s25  ;;  %s157_s7 = sand.u32 1, %s687_s11  }
  0x24   : > { %p45_p11 = scmp.eq.s32.totalorder %s42_s6, 0  ;;  %s422_s8 = sshll.u32 %s157_s7, 3 }
  0x25   : > { %s423_s16 = sshll.u32 %s695_s13, 7  ;;  %s161_s26 = scalar_lea.vmem [#allocation2], %s422_s8 }
  0x26   : > { %s819_s15 = scalar_select %p45_p11, %s687_s11, %s47_s3  }
  0x27   : > { %s167_s24 = scalar_lea.hbm %s903_s0, %s423_s16  ;;  %s169_s27 = sshll.u32 %s161_s26, 4  ;;  %s170_s27 = int_to_ptr.vmem [resolvable:$true] %s169_s27 }
  0x28   : > { %p827_p2 = pnand %p505_p0, %p804_p12  ;;  %s158_s28 = scalar_lea.sflag [#allocation3], %s157_s7 }
  0x29   : > { %s600_s29 = scalar_lea.vmem %s170_s27, 128  ;;  %s704_s30 = smov [#allocation2]  }
  0x2a   : > { %p589_p3 = pneg %p827_p2  ;;  %p601_p5 = scmp.ne.s32.totalorder %s170_s27, %s600_s29 }
  0x2b   : > { %s605_s3 = sshll.u32 %s704_s30, 4  ;;  %s606_s3 = int_to_ptr.vmem [resolvable:$false] %s605_s3 }
  0x2c   : > { %p603_p7 = pnand %p601_p5, %p589_p3  ;;  %s607_s6 = scalar_lea.vmem %s606_s3, 256 }
  0x2d   : > { %p608_p4 = scmp.lt.s32.totalorder %s170_s27, %s606_s3  ;;  %p609_p9 = scmp.lt.s32.totalorder %s607_s6, %s600_s29 }
  0x2e   : > { %p604_p6 = pneg %p603_p7 }
  0x2f   : > { %p610_p11 = por %p609_p9, %p608_p4 }
  0x31   : > { %p611_p10 = pnand %p610_p11, %p604_p6 }
  0x33   : > { %614 = shalt.err (!%p611_p10)
}
  0x34   : > { %499 = dma.hbm_to_vmem [thread:$0]  (!%p827_p2), %s167_s24, 128, %s170_s27, %s158_s28  }
  0x35   : > { %178 = sbr.rel (%p777_p8) target bundleno = 301 (0x12d), region = 28  ;;  %s838_s4 = sand.u32 (!%p777_p8), 1, %s683_s10  }
  0x36   : > { %s425_s7 = sshll.u32 (!%p777_p8), %s838_s4, 3  ;;  %s181_s8 = scalar_lea.sflag (!%p777_p8), [#allocation3], %s838_s4 }
  0x37   : > { %s844_s16 = scalar_lea.vmem (!%p777_p8), [#allocation2], %s425_s7  ;;  %p916_p12 = scmp.ne.s32.totalorder (!%p777_p8), %s909_s19, 0 }
  0x3a   : > { %666 = dma.done.wait (%p916_p12), %s181_s8, 128  }
  0x3b   : > { %668 = vsyncadd (%p916_p12), %s181_s8, 4294967168 }
  0x3c   : > { %670 = dma.done.wait (%p757_p1), [#allocation6], 2048  }
  0x3d   : > { %672 = vsyncadd (%p757_p1), [#allocation6], 4294965248  ;;  %v705_v0 = vmov 0.0   ;;  %vm706_vm0 = vmmov 0   ;;  %v232_v1 = vld [vmem:[#allocation5 + $0x78] sm:$0xff]  ;;  %v231_v2 = vld [vmem:[#allocation5 + $0x70] sm:$0xff] }
  0x3e   : > { %449 = vmatprep.subr.mxu0 %v705_v0  ;;  %481 = vmatprep.mubr.msk.f32.mxu0 %vm706_vm0, %v705_v0  ;;  %v230_v3 = vld [vmem:[#allocation5 + $0x68] sm:$0xff]  ;;  %v229_v4 = vld [vmem:[#allocation5 + $0x60] sm:$0xff]  ;;  %v228_v5 = vld [vmem:[#allocation5 + $0x58] sm:$0xff]  ;;  %s429_s17 = sshll.u32 %s691_s12, 7  ;;  %s208_s19 = scalar_lea.vmem [#allocation7], %s425_s7 }
  0x3f   : > { %450 = vmatpush3.msra.mxu0 %v232_v1  ;;  %v227_v6 = vld [vmem:[#allocation5 + $0x50] sm:$0xff]  ;;  %v226_v7 = vld [vmem:[#allocation5 + $0x48] sm:$0xff]  ;;  %v225_v8 = vld [vmem:[#allocation5 + $0x40] sm:$0xff]  ;;  %s320_s21 = sshll.u32 %s208_s19, 4  ;;  %s861_s24 = scalar_lea.hbm %s905_s2, %s429_s17  ;;  %s321_s21 = int_to_ptr.vmem [resolvable:$true] %s320_s21 }
  0x40   : > { %451 = vmatprep.subr.mxu0 %v705_v0  ;;  %v224_v9 = vld [vmem:[#allocation5 + $0x38] sm:$0xff]  ;;  %v223_v10 = vld [vmem:[#allocation5 + $0x30] sm:$0xff]  ;;  %v222_v11 = vld [vmem:[#allocation5 + $0x28] sm:$0xff]  ;;  %s306_s26 = scalar_lea.sflag [#allocation4], %s838_s4  ;;  %s615_s27 = scalar_lea.vmem %s321_s21, 128 }
  0x41   : > { %452 = vmatpush3.msra.mxu0 %v231_v2  ;;  %v221_v12 = vld [vmem:[#allocation5 + $0x20] sm:$0xff]  ;;  %v220_v13 = vld [vmem:[#allocation5 + $0x18] sm:$0xff]  ;;  %v219_v14 = vld [vmem:[#allocation5 + $0x10] sm:$0xff]  ;;  %p616_p1 = scmp.ne.s32.totalorder %s321_s21, %s615_s27  ;;  %s707_s18 = smov [#allocation7]  }
  0x42   : > { %453 = vmatprep.subr.mxu0 %v705_v0  ;;  %v218_v15 = vld [vmem:[#allocation5 + $0x8] sm:$0xff]  ;;  %v217_v16 = vld [vmem:[#allocation5] sm:$0xff]  ;;  %v216_v17 = vld [vmem:[%s844_s16] sm:$0xff]  ;;  %s619_s12 = sshll.u32 %s707_s18, 4  ;;  %s620_s12 = int_to_ptr.vmem [resolvable:$false] %s619_s12 }
  0x43   : > { %454 = vmatpush3.msra.mxu0 %v230_v3  ;;  %p617_p8 = pnand %p616_p1, %p810_p13  ;;  %s621_s28 = scalar_lea.vmem %s620_s12, 256 }
  0x44   : > { %455 = vmatprep.subr.mxu0 %v705_v0  ;;  %p622_p0 = scmp.lt.s32.totalorder %s321_s21, %s620_s12  ;;  %p623_p2 = scmp.lt.s32.totalorder %s621_s28, %s615_s27 }
  0x45   : > { %456 = vmatpush3.msra.mxu0 %v229_v4  ;;  %p618_p10 = pneg %p617_p8 }
  0x46   : > { %457 = vmatprep.subr.mxu0 %v705_v0  ;;  %p624_p3 = por %p623_p2, %p622_p0 }
  0x47   : > { %458 = vmatpush3.msra.mxu0 %v228_v5 }
  0x48   : > { %459 = vmatprep.subr.mxu0 %v705_v0  ;;  %p625_p5 = pnand %p624_p3, %p618_p10 }
  0x49   : > { %460 = vmatpush3.msra.mxu0 %v227_v6 }
  0x4a   : > { %461 = vmatprep.subr.mxu0 %v705_v0 }
  0x4b   : > { %462 = vmatpush3.msra.mxu0 %v226_v7 }
  0x4c   : > { %463 = vmatprep.subr.mxu0 %v705_v0 }
  0x4d   : > { %464 = vmatpush3.msra.mxu0 %v225_v8 }
  0x4e   : > { %465 = vmatprep.subr.mxu0 %v705_v0 }
  0x4f   : > { %466 = vmatpush3.msra.mxu0 %v224_v9 }
  0x50   : > { %467 = vmatprep.subr.mxu0 %v705_v0 }
  0x51   : > { %468 = vmatpush3.msra.mxu0 %v223_v10 }
  0x52   : > { %469 = vmatprep.subr.mxu0 %v705_v0 }
  0x53   : > { %470 = vmatpush3.msra.mxu0 %v222_v11 }
  0x54   : > { %471 = vmatprep.subr.mxu0 %v705_v0 }
  0x55   : > { %472 = vmatpush3.msra.mxu0 %v221_v12 }
  0x56   : > { %473 = vmatprep.subr.mxu0 %v705_v0 }
  0x57   : > { %474 = vmatpush3.msra.mxu0 %v220_v13 }
  0x58   : > { %475 = vmatprep.subr.mxu0 %v705_v0 }
  0x59   : > { %476 = vmatpush3.msra.mxu0 %v219_v14 }
  0x5a   : > { %477 = vmatprep.subr.mxu0 %v705_v0 }
  0x5b   : > { %478 = vmatpush3.msra.mxu0 %v218_v15 }
  0x5c   : > { %479 = vmatprep.subr.mxu0 %v705_v0 }
  0x5d   : > { %480 = vmatpush3.msra.mxu0 %v217_v16 }
  0x5e   : > { %482 = vmatmul.mubr.f32.vlgmr.msra.gmra.mxu0 %v216_v17 }
 0x11e   : > { %v299_v18 = vpop.f32.mrf.mxu0 }
 0x11f   : > { %304 = vst [vmem:[%s208_s19] sm:$0xff] %v299_v18 }
 0x120   : > { %v483_v19 = vpop.f32.mrf.mxu0 }
 0x121   : > { %628 = shalt.err (!%p625_p5)
}
 0x122   : > { %s629_s29 = scalar_lea.hbm %s861_s24, 128  ;;  %s633_s6 = scalar_lea.hbm %s905_s2, 256 }
 0x123   : > { %p630_p7 = scmp.ne.s32.totalorder %s861_s24, %s629_s29  ;;  %p634_p9 = scmp.lt.s32.totalorder %s861_s24, %s905_s2 }
 0x124   : > { %p635_p11 = scmp.lt.s32.totalorder %s633_s6, %s629_s29 }
 0x125   : > { %p631_p6 = pnand %p630_p7, %p810_p13 }
 0x126   : > { %p636_p12 = por %p635_p11, %p634_p9 }
 0x127   : > { %p632_p4 = pneg %p631_p6 }
 0x129   : > { %p637_p1 = pnand %p636_p12, %p632_p4 }
 0x12b   : > { %640 = shalt.err (!%p637_p1)
}
 0x12c   : > { %490 = dma.vmem_to_hbm [thread:$0]  (%p810_p13), %s321_s21, 128, %s861_s24, %s306_s26  }
 0x12d PF: > { %s332_s8 = sand.u32 1, %s679_s9   ;;  %p917_p8 = scmp.ne.s32.totalorder %s910_s20, 0 }
 0x12e   : > { %p918_p10 = scmp.ge.s32.totalorder %s699_s14, 2  ;;  %s333_s16 = scalar_lea.sflag [#allocation4], %s332_s8 }
 0x130   : > { %p501_p0 = pnand %p918_p10, %p917_p8 }
 0x132   : > { %p502_p2 = pneg %p501_p0 }
 0x134   : > { %674 = dma.done.wait (%p502_p2), %s333_s16, 128  }
 0x135   : > { %676 = vsyncadd (%p502_p2), %s333_s16, 4294967168  ;;  %s19_s14 = sadd.s32 1, %s699_s14   ;;  %s919_s9 = smov %s683_s10 }
 0x136   : > { %p16_p3 = scmp.ge.s32.totalorder %s19_s14, 4   ;;  %s920_s10 = smov %s687_s11 }
 0x137   : > { %s921_s11 = smov %s819_s15  ;;  %s922_s12 = smov %s695_s13 }
 0x138   : > { %s923_s13 = smov %s925_s25  ;;  %18 = sbr.rel (!%p16_p3) target bundleno = 7 (0x7), region = 82 }
 0x13d   :  { %338 = vsyncpa [#allocation3], 1 }
 0x13e   :  { %340 = vsyncpa [#allocation3 + $0x1], 1 }
 0x13f   :  { %341 = vsyncpa [#allocation6], 1 }
 0x140   :  { %342 = vsyncpa [#allocation4], 1 }
 0x141   :  { %344 = vsyncpa [#allocation4 + $0x1], 1 }

</bundles_post_ra>
